<compile_context>
chip_gen: v7x
topology: tpu7x:2x2x1
jax: 0.10.0
libtpu: 0.0.40
codegen_flags: <defaults>
</compile_context>

<pallas_src>
import functools

import jax
import jax.numpy as jnp
from jax import lax
from jax.experimental import pallas as pl
from jax.experimental.pallas import tpu as pltpu


def _mec_kernel(x_ref, y_ref, o_ref, *, n_valid_rows: int, rows_per_tile: int,
                num_classes: int, pack: int):
    """One grid step = one tile of `rows_per_tile` packed rows.

    A packed row holds `pack` logical batch rows laid out side by side along the
    lane axis (pack * num_classes lanes).  All math is f32 in-kernel.
    """
    i = pl.program_id(0)
    C = num_classes
    G = pack
    L = G * C

    x = x_ref[...].astype(jnp.float32)          # (TBP, L)
    y = y_ref[...].astype(jnp.float32)          # (TBP, L)
    xy = x + y

    neg_inf = -jnp.inf
    if G > 1:
        lane = lax.broadcasted_iota(jnp.int32, (1, L), 1)
        seg_masks = [(lane >= g * C) & (lane < (g + 1) * C) for g in range(G)]
    else:
        seg_masks = [None]

    # --- per-segment maxes (XLU reductions over the lane axis) ---------------
    mx_seg, my_seg, mxy_seg = [], [], []
    for g in range(G):
        if G == 1:
            xs, ys, xys = x, y, xy
        else:
            seg = seg_masks[g]
            xs = jnp.where(seg, x, neg_inf)
            ys = jnp.where(seg, y, neg_inf)
            xys = jnp.where(seg, xy, neg_inf)
        mx_seg.append(jnp.max(xs, axis=1, keepdims=True))      # (TBP, 1)
        my_seg.append(jnp.max(ys, axis=1, keepdims=True))
        mxy_seg.append(jnp.max(xys, axis=1, keepdims=True))

    # Per-lane "own segment" max, so a single exp covers the whole packed row.
    if G == 1:
        m_x_full = mx_seg[0]
        m_y_full = my_seg[0]
    else:
        m_x_full = jnp.where(seg_masks[0], mx_seg[0], 0.0)
        m_y_full = jnp.where(seg_masks[0], my_seg[0], 0.0)
        for g in range(1, G):
            m_x_full = m_x_full + jnp.where(seg_masks[g], mx_seg[g], 0.0)
            m_y_full = m_y_full + jnp.where(seg_masks[g], my_seg[g], 0.0)

    # --- the only EUP-heavy work: one exp per input over the dense packed row
    ex = jnp.exp(x - m_x_full)                  # <= 1 everywhere (valid rows)
    ey = jnp.exp(y - m_y_full)

    # --- per-segment stable log-sum-exp + closed-form min -------------------
    row_loss = None
    for g in range(G):
        if G == 1:
            s_x = jnp.sum(ex, axis=1, keepdims=True)
            s_y = jnp.sum(ey, axis=1, keepdims=True)
        else:
            seg = seg_masks[g]
            s_x = jnp.sum(jnp.where(seg, ex, 0.0), axis=1, keepdims=True)
            s_y = jnp.sum(jnp.where(seg, ey, 0.0), axis=1, keepdims=True)
        # lse_x + lse_y = mx + my + log(s_x * s_y)   (one log instead of two)
        loss_g = 0.5 * (mx_seg[g] + my_seg[g] + jnp.log(s_x * s_y) - mxy_seg[g])
        row_loss = loss_g if row_loss is None else row_loss + loss_g   # (TBP,1)

    # Mask packed rows past the true packed-batch (last partial grid tile).
    ridx = i * rows_per_tile + lax.broadcasted_iota(jnp.int32, row_loss.shape, 0)
    row_loss = jnp.where(ridx < n_valid_rows, row_loss, 0.0)

    # Per-tile partial sum, written to a full lane-dense (8,128) block.
    partial = jnp.sum(row_loss, axis=0, keepdims=True)          # (1, 1)
    o_ref[...] = jnp.broadcast_to(partial, o_ref.shape).astype(jnp.float32)


def _pick_pack(batch: int, num_classes: int, max_pack: int = 16) -> int:
    """Largest G <= 128//C (capped) that divides the batch; G=1 disables packing."""
    g_max = max(1, min(max_pack, 128 // num_classes))
    for g in range(g_max, 0, -1):
        if batch % g == 0:
            return g
    return 1


def _vmem_limit_bytes() -> int:
    cap = None
    try:
        info = pltpu.get_tpu_info()
        for name in ("vmem_capacity_bytes", "vmem_size_bytes", "vmem_bytes"):
            cap = getattr(info, name, None)
            if cap:
                break
    except Exception:
        cap = None
    if not cap:
        cap = 64 * 1024 * 1024          # conservative: v7x per-TensorCore physical
    # ~3/4 of physical, floored/capped: v5e/v6e (128 MiB phys) -> 96 MiB,
    # v7x (64 MiB phys) -> 48 MiB.
    return int(min(max(cap * 3 // 4, 32 * 1024 * 1024), 96 * 1024 * 1024))


def min_entropy_consensus_loss(x: jax.Array, y: jax.Array) -> jax.Array:
    """x, y: (B, num_classes) logits. Returns scalar loss (float32)."""
    assert x.shape == y.shape and x.ndim == 2, "x and y must both be (B, num_classes)"
    B, C = x.shape

    # --- lane packing (free contiguous reshape) -----------------------------
    G = _pick_pack(B, C)
    BP = B // G                      # packed rows
    L = G * C                        # packed lanes
    xp = x.reshape(BP, L)
    yp = y.reshape(BP, L)

    # --- tile sizing ---------------------------------------------------------
    lanes_pad = ((L + 127) // 128) * 128
    in_itemsize = max(x.dtype.itemsize, y.dtype.itemsize)
    vmem_limit = _vmem_limit_bytes()
    budget = vmem_limit // 2         # headroom for Mosaic scratch / output / pipelining
    # Per packed row: 2 inputs x 2 pipeline buffers (input dtype) + ~12 full-tile
    # f32 temporaries (casts, x+y, masked copies, exps, per-lane maxes).
    bytes_per_row = 2 * 2 * lanes_pad * in_itemsize + 12 * lanes_pad * 4
    tbp = budget // bytes_per_row
    tbp = max(8, min(tbp, 4096))
    tbp -= tbp % 8
    # Keep >= 2 grid steps when there is enough work so v7x's two TensorCores
    # both get a share of the "parallel" grid axis.
    if BP >= 16:
        half = ((-(-BP // 2)) + 7) // 8 * 8
        tbp = min(tbp, half)
    if BP <= tbp:
        tbp = BP                     # full-extent block is always legal
    grid = -(-BP // tbp)
    # TODO(synk): if VMEM ever forces tiny tiles, add pipeline_mode=pl.Buffered(3)
    # on the input BlockSpecs (mainly relevant on v7x).

    kernel = functools.partial(_mec_kernel, n_valid_rows=BP, rows_per_tile=tbp,
                               num_classes=C, pack=G)

    bytes_in = x.size * x.dtype.itemsize + y.size * y.dtype.itemsize
    cost = pl.CostEstimate(
        flops=12 * B * C,
        transcendentals=2 * B * C + 2 * B,
        bytes_accessed=int(bytes_in) + grid * 8 * 128 * 4,
    )

    partials = pl.pallas_call(
        kernel,
        out_shape=jax.ShapeDtypeStruct((grid, 8, 128), jnp.float32),
        grid_spec=pltpu.PrefetchScalarGridSpec(
            num_scalar_prefetch=0,
            grid=(grid,),
            in_specs=[
                pl.BlockSpec((tbp, L), lambda i: (i, 0)),
                pl.BlockSpec((tbp, L), lambda i: (i, 0)),
            ],
            out_specs=pl.BlockSpec((1, 8, 128), lambda i: (i, 0, 0)),
        ),
        compiler_params=pltpu.CompilerParams(
            dimension_semantics=("parallel",),      # no loop-carried state
            vmem_limit_bytes=int(vmem_limit),
        ),
        cost_estimate=cost,
    )(xp, yp)

    # Tiny final reduction + mean in plain JAX (denominator is the true B).
    return jnp.sum(partials[:, 0, 0]) / jnp.float32(B)


def _reference_loss(x: jax.Array, y: jax.Array) -> jax.Array:
    lx = jax.nn.log_softmax(x.astype(jnp.float32), axis=1)
    ly = jax.nn.log_softmax(y.astype(jnp.float32), axis=1)
    return 0.5 * jnp.mean(jnp.min(-(lx + ly), axis=1))


if __name__ == "__main__":
    key = jax.random.PRNGKey(0)

    def check(batch, classes, dtype):
        kx, ky = jax.random.split(jax.random.fold_in(key, batch * 1000 + classes))
        x = jax.random.normal(kx, (batch, classes), dtype=jnp.float32).astype(dtype)
        y = jax.random.normal(ky, (batch, classes), dtype=jnp.float32).astype(dtype)
        out = jax.block_until_ready(min_entropy_consensus_loss(x, y))
        ref = jax.block_until_ready(_reference_loss(x, y))
        assert jnp.allclose(out, ref, rtol=1e-5, atol=1e-5), (batch, classes, dtype, out, ref)

    check(64, 31, jnp.float32)    # typical: num_classes=31, pack G=4
    check(13, 7, jnp.float32)     # odd sizes, everything in one packed row
    check(8, 200, jnp.bfloat16)   # wide classes -> unpacked path, bf16 inputs
    print("KERNEL_OK")
</pallas_src>

<mosaic_0001>
module attributes {stable_mosaic.version = 11 : i64} {
  func.func @_mec_kernel(%arg0: i32, %arg1: memref<8x124xf32, #tpu.memory_space<vmem>>, %arg2: memref<8x124xf32, #tpu.memory_space<vmem>>, %arg3: memref<1x8x128xf32, #tpu.memory_space<vmem>>) attributes {dimension_semantics = [#tpu.dimension_semantics<parallel>], iteration_bounds = array<i64: 2>, scalar_prefetch = 0 : i64, scratch_operands = 0 : i64, tpu.core_type = #tpu.core_type<tc>, window_params = [{transform_indices = @transform_0, window_bounds = array<i64: 8, 124>}, {transform_indices = @transform_1, window_bounds = array<i64: 8, 124>}, {transform_indices = @transform_2, window_bounds = array<i64: 1, 8, 128>}]} {
    %c0 = arith.constant 0 : index
    %c0_0 = arith.constant 0 : index
    %0 = vector.load %arg1[%c0, %c0_0] : memref<8x124xf32, #tpu.memory_space<vmem>>, vector<8x124xf32>
    %c0_1 = arith.constant 0 : index
    %c0_2 = arith.constant 0 : index
    %1 = vector.load %arg2[%c0_1, %c0_2] : memref<8x124xf32, #tpu.memory_space<vmem>>, vector<8x124xf32>
    %2 = arith.addf %0, %1 : vector<8x124xf32>
    %3 = tpu.iota {dimensions = array<i32: 1>} : vector<1x124xi32>
    %c0_i32 = arith.constant 0 : i32
    %4 = vector.broadcast %c0_i32 : i32 to vector<1x124xi32>
    %5 = arith.cmpi sge, %3, %4 : vector<1x124xi32>
    %c31_i32 = arith.constant 31 : i32
    %6 = vector.broadcast %c31_i32 : i32 to vector<1x124xi32>
    %7 = arith.cmpi slt, %3, %6 : vector<1x124xi32>
    %8 = arith.andi %5, %7 : vector<1x124xi1>
    %c31_i32_3 = arith.constant 31 : i32
    %9 = vector.broadcast %c31_i32_3 : i32 to vector<1x124xi32>
    %10 = arith.cmpi sge, %3, %9 : vector<1x124xi32>
    %c62_i32 = arith.constant 62 : i32
    %11 = vector.broadcast %c62_i32 : i32 to vector<1x124xi32>
    %12 = arith.cmpi slt, %3, %11 : vector<1x124xi32>
    %13 = arith.andi %10, %12 : vector<1x124xi1>
    %c62_i32_4 = arith.constant 62 : i32
    %14 = vector.broadcast %c62_i32_4 : i32 to vector<1x124xi32>
    %15 = arith.cmpi sge, %3, %14 : vector<1x124xi32>
    %c93_i32 = arith.constant 93 : i32
    %16 = vector.broadcast %c93_i32 : i32 to vector<1x124xi32>
    %17 = arith.cmpi slt, %3, %16 : vector<1x124xi32>
    %18 = arith.andi %15, %17 : vector<1x124xi1>
    %c93_i32_5 = arith.constant 93 : i32
    %19 = vector.broadcast %c93_i32_5 : i32 to vector<1x124xi32>
    %20 = arith.cmpi sge, %3, %19 : vector<1x124xi32>
    %c124_i32 = arith.constant 124 : i32
    %21 = vector.broadcast %c124_i32 : i32 to vector<1x124xi32>
    %22 = arith.cmpi slt, %3, %21 : vector<1x124xi32>
    %23 = arith.andi %20, %22 : vector<1x124xi1>
    %cst = arith.constant 0xFF800000 : f32
    %24 = vector.shape_cast %8 : vector<1x124xi1> to vector<1x124xi1>
    %25 = vector.broadcast %24 : vector<1x124xi1> to vector<8x124xi1>
    %26 = vector.broadcast %cst : f32 to vector<8x124xf32>
    %27 = arith.select %25, %0, %26 : vector<8x124xi1>, vector<8x124xf32>
    %cst_6 = arith.constant 0xFF800000 : f32
    %28 = vector.shape_cast %8 : vector<1x124xi1> to vector<1x124xi1>
    %29 = vector.broadcast %28 : vector<1x124xi1> to vector<8x124xi1>
    %30 = vector.broadcast %cst_6 : f32 to vector<8x124xf32>
    %31 = arith.select %29, %1, %30 : vector<8x124xi1>, vector<8x124xf32>
    %cst_7 = arith.constant 0xFF800000 : f32
    %32 = vector.shape_cast %8 : vector<1x124xi1> to vector<1x124xi1>
    %33 = vector.broadcast %32 : vector<1x124xi1> to vector<8x124xi1>
    %34 = vector.broadcast %cst_7 : f32 to vector<8x124xf32>
    %35 = arith.select %33, %2, %34 : vector<8x124xi1>, vector<8x124xf32>
    %cst_8 = arith.constant dense<0xFF800000> : vector<8xf32>
    %36 = vector.multi_reduction <maximumf>, %27, %cst_8 [1] : vector<8x124xf32> to vector<8xf32>
    %37 = vector.shape_cast %36 : vector<8xf32> to vector<8x1xf32>
    %cst_9 = arith.constant dense<0xFF800000> : vector<8xf32>
    %38 = vector.multi_reduction <maximumf>, %31, %cst_9 [1] : vector<8x124xf32> to vector<8xf32>
    %39 = vector.shape_cast %38 : vector<8xf32> to vector<8x1xf32>
    %cst_10 = arith.constant dense<0xFF800000> : vector<8xf32>
    %40 = vector.multi_reduction <maximumf>, %35, %cst_10 [1] : vector<8x124xf32> to vector<8xf32>
    %41 = vector.shape_cast %40 : vector<8xf32> to vector<8x1xf32>
    %cst_11 = arith.constant 0xFF800000 : f32
    %42 = vector.shape_cast %13 : vector<1x124xi1> to vector<1x124xi1>
    %43 = vector.broadcast %42 : vector<1x124xi1> to vector<8x124xi1>
    %44 = vector.broadcast %cst_11 : f32 to vector<8x124xf32>
    %45 = arith.select %43, %0, %44 : vector<8x124xi1>, vector<8x124xf32>
    %cst_12 = arith.constant 0xFF800000 : f32
    %46 = vector.shape_cast %13 : vector<1x124xi1> to vector<1x124xi1>
    %47 = vector.broadcast %46 : vector<1x124xi1> to vector<8x124xi1>
    %48 = vector.broadcast %cst_12 : f32 to vector<8x124xf32>
    %49 = arith.select %47, %1, %48 : vector<8x124xi1>, vector<8x124xf32>
    %cst_13 = arith.constant 0xFF800000 : f32
    %50 = vector.shape_cast %13 : vector<1x124xi1> to vector<1x124xi1>
    %51 = vector.broadcast %50 : vector<1x124xi1> to vector<8x124xi1>
    %52 = vector.broadcast %cst_13 : f32 to vector<8x124xf32>
    %53 = arith.select %51, %2, %52 : vector<8x124xi1>, vector<8x124xf32>
    %cst_14 = arith.constant dense<0xFF800000> : vector<8xf32>
    %54 = vector.multi_reduction <maximumf>, %45, %cst_14 [1] : vector<8x124xf32> to vector<8xf32>
    %55 = vector.shape_cast %54 : vector<8xf32> to vector<8x1xf32>
    %cst_15 = arith.constant dense<0xFF800000> : vector<8xf32>
    %56 = vector.multi_reduction <maximumf>, %49, %cst_15 [1] : vector<8x124xf32> to vector<8xf32>
    %57 = vector.shape_cast %56 : vector<8xf32> to vector<8x1xf32>
    %cst_16 = arith.constant dense<0xFF800000> : vector<8xf32>
    %58 = vector.multi_reduction <maximumf>, %53, %cst_16 [1] : vector<8x124xf32> to vector<8xf32>
    %59 = vector.shape_cast %58 : vector<8xf32> to vector<8x1xf32>
    %cst_17 = arith.constant 0xFF800000 : f32
    %60 = vector.shape_cast %18 : vector<1x124xi1> to vector<1x124xi1>
    %61 = vector.broadcast %60 : vector<1x124xi1> to vector<8x124xi1>
    %62 = vector.broadcast %cst_17 : f32 to vector<8x124xf32>
    %63 = arith.select %61, %0, %62 : vector<8x124xi1>, vector<8x124xf32>
    %cst_18 = arith.constant 0xFF800000 : f32
    %64 = vector.shape_cast %18 : vector<1x124xi1> to vector<1x124xi1>
    %65 = vector.broadcast %64 : vector<1x124xi1> to vector<8x124xi1>
    %66 = vector.broadcast %cst_18 : f32 to vector<8x124xf32>
    %67 = arith.select %65, %1, %66 : vector<8x124xi1>, vector<8x124xf32>
    %cst_19 = arith.constant 0xFF800000 : f32
    %68 = vector.shape_cast %18 : vector<1x124xi1> to vector<1x124xi1>
    %69 = vector.broadcast %68 : vector<1x124xi1> to vector<8x124xi1>
    %70 = vector.broadcast %cst_19 : f32 to vector<8x124xf32>
    %71 = arith.select %69, %2, %70 : vector<8x124xi1>, vector<8x124xf32>
    %cst_20 = arith.constant dense<0xFF800000> : vector<8xf32>
    %72 = vector.multi_reduction <maximumf>, %63, %cst_20 [1] : vector<8x124xf32> to vector<8xf32>
    %73 = vector.shape_cast %72 : vector<8xf32> to vector<8x1xf32>
    %cst_21 = arith.constant dense<0xFF800000> : vector<8xf32>
    %74 = vector.multi_reduction <maximumf>, %67, %cst_21 [1] : vector<8x124xf32> to vector<8xf32>
    %75 = vector.shape_cast %74 : vector<8xf32> to vector<8x1xf32>
    %cst_22 = arith.constant dense<0xFF800000> : vector<8xf32>
    %76 = vector.multi_reduction <maximumf>, %71, %cst_22 [1] : vector<8x124xf32> to vector<8xf32>
    %77 = vector.shape_cast %76 : vector<8xf32> to vector<8x1xf32>
    %cst_23 = arith.constant 0xFF800000 : f32
    %78 = vector.shape_cast %23 : vector<1x124xi1> to vector<1x124xi1>
    %79 = vector.broadcast %78 : vector<1x124xi1> to vector<8x124xi1>
    %80 = vector.broadcast %cst_23 : f32 to vector<8x124xf32>
    %81 = arith.select %79, %0, %80 : vector<8x124xi1>, vector<8x124xf32>
    %cst_24 = arith.constant 0xFF800000 : f32
    %82 = vector.shape_cast %23 : vector<1x124xi1> to vector<1x124xi1>
    %83 = vector.broadcast %82 : vector<1x124xi1> to vector<8x124xi1>
    %84 = vector.broadcast %cst_24 : f32 to vector<8x124xf32>
    %85 = arith.select %83, %1, %84 : vector<8x124xi1>, vector<8x124xf32>
    %cst_25 = arith.constant 0xFF800000 : f32
    %86 = vector.shape_cast %23 : vector<1x124xi1> to vector<1x124xi1>
    %87 = vector.broadcast %86 : vector<1x124xi1> to vector<8x124xi1>
    %88 = vector.broadcast %cst_25 : f32 to vector<8x124xf32>
    %89 = arith.select %87, %2, %88 : vector<8x124xi1>, vector<8x124xf32>
    %cst_26 = arith.constant dense<0xFF800000> : vector<8xf32>
    %90 = vector.multi_reduction <maximumf>, %81, %cst_26 [1] : vector<8x124xf32> to vector<8xf32>
    %91 = vector.shape_cast %90 : vector<8xf32> to vector<8x1xf32>
    %cst_27 = arith.constant dense<0xFF800000> : vector<8xf32>
    %92 = vector.multi_reduction <maximumf>, %85, %cst_27 [1] : vector<8x124xf32> to vector<8xf32>
    %93 = vector.shape_cast %92 : vector<8xf32> to vector<8x1xf32>
    %cst_28 = arith.constant dense<0xFF800000> : vector<8xf32>
    %94 = vector.multi_reduction <maximumf>, %89, %cst_28 [1] : vector<8x124xf32> to vector<8xf32>
    %95 = vector.shape_cast %94 : vector<8xf32> to vector<8x1xf32>
    %cst_29 = arith.constant 0.000000e+00 : f32
    %96 = vector.shape_cast %8 : vector<1x124xi1> to vector<1x124xi1>
    %97 = vector.broadcast %96 : vector<1x124xi1> to vector<8x124xi1>
    %98 = vector.shape_cast %37 : vector<8x1xf32> to vector<8x1xf32>
    %99 = vector.broadcast %98 : vector<8x1xf32> to vector<8x124xf32>
    %100 = vector.broadcast %cst_29 : f32 to vector<8x124xf32>
    %101 = arith.select %97, %99, %100 : vector<8x124xi1>, vector<8x124xf32>
    %cst_30 = arith.constant 0.000000e+00 : f32
    %102 = vector.shape_cast %8 : vector<1x124xi1> to vector<1x124xi1>
    %103 = vector.broadcast %102 : vector<1x124xi1> to vector<8x124xi1>
    %104 = vector.shape_cast %39 : vector<8x1xf32> to vector<8x1xf32>
    %105 = vector.broadcast %104 : vector<8x1xf32> to vector<8x124xf32>
    %106 = vector.broadcast %cst_30 : f32 to vector<8x124xf32>
    %107 = arith.select %103, %105, %106 : vector<8x124xi1>, vector<8x124xf32>
    %cst_31 = arith.constant 0.000000e+00 : f32
    %108 = vector.shape_cast %13 : vector<1x124xi1> to vector<1x124xi1>
    %109 = vector.broadcast %108 : vector<1x124xi1> to vector<8x124xi1>
    %110 = vector.shape_cast %55 : vector<8x1xf32> to vector<8x1xf32>
    %111 = vector.broadcast %110 : vector<8x1xf32> to vector<8x124xf32>
    %112 = vector.broadcast %cst_31 : f32 to vector<8x124xf32>
    %113 = arith.select %109, %111, %112 : vector<8x124xi1>, vector<8x124xf32>
    %114 = arith.addf %101, %113 : vector<8x124xf32>
    %cst_32 = arith.constant 0.000000e+00 : f32
    %115 = vector.shape_cast %13 : vector<1x124xi1> to vector<1x124xi1>
    %116 = vector.broadcast %115 : vector<1x124xi1> to vector<8x124xi1>
    %117 = vector.shape_cast %57 : vector<8x1xf32> to vector<8x1xf32>
    %118 = vector.broadcast %117 : vector<8x1xf32> to vector<8x124xf32>
    %119 = vector.broadcast %cst_32 : f32 to vector<8x124xf32>
    %120 = arith.select %116, %118, %119 : vector<8x124xi1>, vector<8x124xf32>
    %121 = arith.addf %107, %120 : vector<8x124xf32>
    %cst_33 = arith.constant 0.000000e+00 : f32
    %122 = vector.shape_cast %18 : vector<1x124xi1> to vector<1x124xi1>
    %123 = vector.broadcast %122 : vector<1x124xi1> to vector<8x124xi1>
    %124 = vector.shape_cast %73 : vector<8x1xf32> to vector<8x1xf32>
    %125 = vector.broadcast %124 : vector<8x1xf32> to vector<8x124xf32>
    %126 = vector.broadcast %cst_33 : f32 to vector<8x124xf32>
    %127 = arith.select %123, %125, %126 : vector<8x124xi1>, vector<8x124xf32>
    %128 = arith.addf %114, %127 : vector<8x124xf32>
    %cst_34 = arith.constant 0.000000e+00 : f32
    %129 = vector.shape_cast %18 : vector<1x124xi1> to vector<1x124xi1>
    %130 = vector.broadcast %129 : vector<1x124xi1> to vector<8x124xi1>
    %131 = vector.shape_cast %75 : vector<8x1xf32> to vector<8x1xf32>
    %132 = vector.broadcast %131 : vector<8x1xf32> to vector<8x124xf32>
    %133 = vector.broadcast %cst_34 : f32 to vector<8x124xf32>
    %134 = arith.select %130, %132, %133 : vector<8x124xi1>, vector<8x124xf32>
    %135 = arith.addf %121, %134 : vector<8x124xf32>
    %cst_35 = arith.constant 0.000000e+00 : f32
    %136 = vector.shape_cast %23 : vector<1x124xi1> to vector<1x124xi1>
    %137 = vector.broadcast %136 : vector<1x124xi1> to vector<8x124xi1>
    %138 = vector.shape_cast %91 : vector<8x1xf32> to vector<8x1xf32>
    %139 = vector.broadcast %138 : vector<8x1xf32> to vector<8x124xf32>
    %140 = vector.broadcast %cst_35 : f32 to vector<8x124xf32>
    %141 = arith.select %137, %139, %140 : vector<8x124xi1>, vector<8x124xf32>
    %142 = arith.addf %128, %141 : vector<8x124xf32>
    %cst_36 = arith.constant 0.000000e+00 : f32
    %143 = vector.shape_cast %23 : vector<1x124xi1> to vector<1x124xi1>
    %144 = vector.broadcast %143 : vector<1x124xi1> to vector<8x124xi1>
    %145 = vector.shape_cast %93 : vector<8x1xf32> to vector<8x1xf32>
    %146 = vector.broadcast %145 : vector<8x1xf32> to vector<8x124xf32>
    %147 = vector.broadcast %cst_36 : f32 to vector<8x124xf32>
    %148 = arith.select %144, %146, %147 : vector<8x124xi1>, vector<8x124xf32>
    %149 = arith.addf %135, %148 : vector<8x124xf32>
    %150 = arith.subf %0, %142 : vector<8x124xf32>
    %151 = math.exp %150 : vector<8x124xf32>
    %152 = arith.subf %1, %149 : vector<8x124xf32>
    %153 = math.exp %152 : vector<8x124xf32>
    %cst_37 = arith.constant 0.000000e+00 : f32
    %154 = vector.shape_cast %8 : vector<1x124xi1> to vector<1x124xi1>
    %155 = vector.broadcast %154 : vector<1x124xi1> to vector<8x124xi1>
    %156 = vector.broadcast %cst_37 : f32 to vector<8x124xf32>
    %157 = arith.select %155, %151, %156 : vector<8x124xi1>, vector<8x124xf32>
    %cst_38 = arith.constant dense<0.000000e+00> : vector<8xf32>
    %158 = vector.multi_reduction <add>, %157, %cst_38 [1] : vector<8x124xf32> to vector<8xf32>
    %159 = vector.shape_cast %158 : vector<8xf32> to vector<8x1xf32>
    %cst_39 = arith.constant 0.000000e+00 : f32
    %160 = vector.shape_cast %8 : vector<1x124xi1> to vector<1x124xi1>
    %161 = vector.broadcast %160 : vector<1x124xi1> to vector<8x124xi1>
    %162 = vector.broadcast %cst_39 : f32 to vector<8x124xf32>
    %163 = arith.select %161, %153, %162 : vector<8x124xi1>, vector<8x124xf32>
    %cst_40 = arith.constant dense<0.000000e+00> : vector<8xf32>
    %164 = vector.multi_reduction <add>, %163, %cst_40 [1] : vector<8x124xf32> to vector<8xf32>
    %165 = vector.shape_cast %164 : vector<8xf32> to vector<8x1xf32>
    %166 = arith.addf %37, %39 : vector<8x1xf32>
    %167 = arith.mulf %159, %165 : vector<8x1xf32>
    %168 = math.log %167 : vector<8x1xf32>
    %169 = arith.addf %166, %168 : vector<8x1xf32>
    %170 = arith.subf %169, %41 : vector<8x1xf32>
    %cst_41 = arith.constant 5.000000e-01 : f32
    %171 = vector.broadcast %cst_41 : f32 to vector<8x1xf32>
    %172 = arith.mulf %171, %170 : vector<8x1xf32>
    %cst_42 = arith.constant 0.000000e+00 : f32
    %173 = vector.shape_cast %13 : vector<1x124xi1> to vector<1x124xi1>
    %174 = vector.broadcast %173 : vector<1x124xi1> to vector<8x124xi1>
    %175 = vector.broadcast %cst_42 : f32 to vector<8x124xf32>
    %176 = arith.select %174, %151, %175 : vector<8x124xi1>, vector<8x124xf32>
    %cst_43 = arith.constant dense<0.000000e+00> : vector<8xf32>
    %177 = vector.multi_reduction <add>, %176, %cst_43 [1] : vector<8x124xf32> to vector<8xf32>
    %178 = vector.shape_cast %177 : vector<8xf32> to vector<8x1xf32>
    %cst_44 = arith.constant 0.000000e+00 : f32
    %179 = vector.shape_cast %13 : vector<1x124xi1> to vector<1x124xi1>
    %180 = vector.broadcast %179 : vector<1x124xi1> to vector<8x124xi1>
    %181 = vector.broadcast %cst_44 : f32 to vector<8x124xf32>
    %182 = arith.select %180, %153, %181 : vector<8x124xi1>, vector<8x124xf32>
    %cst_45 = arith.constant dense<0.000000e+00> : vector<8xf32>
    %183 = vector.multi_reduction <add>, %182, %cst_45 [1] : vector<8x124xf32> to vector<8xf32>
    %184 = vector.shape_cast %183 : vector<8xf32> to vector<8x1xf32>
    %185 = arith.addf %55, %57 : vector<8x1xf32>
    %186 = arith.mulf %178, %184 : vector<8x1xf32>
    %187 = math.log %186 : vector<8x1xf32>
    %188 = arith.addf %185, %187 : vector<8x1xf32>
    %189 = arith.subf %188, %59 : vector<8x1xf32>
    %cst_46 = arith.constant 5.000000e-01 : f32
    %190 = vector.broadcast %cst_46 : f32 to vector<8x1xf32>
    %191 = arith.mulf %190, %189 : vector<8x1xf32>
    %192 = arith.addf %172, %191 : vector<8x1xf32>
    %cst_47 = arith.constant 0.000000e+00 : f32
    %193 = vector.shape_cast %18 : vector<1x124xi1> to vector<1x124xi1>
    %194 = vector.broadcast %193 : vector<1x124xi1> to vector<8x124xi1>
    %195 = vector.broadcast %cst_47 : f32 to vector<8x124xf32>
    %196 = arith.select %194, %151, %195 : vector<8x124xi1>, vector<8x124xf32>
    %cst_48 = arith.constant dense<0.000000e+00> : vector<8xf32>
    %197 = vector.multi_reduction <add>, %196, %cst_48 [1] : vector<8x124xf32> to vector<8xf32>
    %198 = vector.shape_cast %197 : vector<8xf32> to vector<8x1xf32>
    %cst_49 = arith.constant 0.000000e+00 : f32
    %199 = vector.shape_cast %18 : vector<1x124xi1> to vector<1x124xi1>
    %200 = vector.broadcast %199 : vector<1x124xi1> to vector<8x124xi1>
    %201 = vector.broadcast %cst_49 : f32 to vector<8x124xf32>
    %202 = arith.select %200, %153, %201 : vector<8x124xi1>, vector<8x124xf32>
    %cst_50 = arith.constant dense<0.000000e+00> : vector<8xf32>
    %203 = vector.multi_reduction <add>, %202, %cst_50 [1] : vector<8x124xf32> to vector<8xf32>
    %204 = vector.shape_cast %203 : vector<8xf32> to vector<8x1xf32>
    %205 = arith.addf %73, %75 : vector<8x1xf32>
    %206 = arith.mulf %198, %204 : vector<8x1xf32>
    %207 = math.log %206 : vector<8x1xf32>
    %208 = arith.addf %205, %207 : vector<8x1xf32>
    %209 = arith.subf %208, %77 : vector<8x1xf32>
    %cst_51 = arith.constant 5.000000e-01 : f32
    %210 = vector.broadcast %cst_51 : f32 to vector<8x1xf32>
    %211 = arith.mulf %210, %209 : vector<8x1xf32>
    %212 = arith.addf %192, %211 : vector<8x1xf32>
    %cst_52 = arith.constant 0.000000e+00 : f32
    %213 = vector.shape_cast %23 : vector<1x124xi1> to vector<1x124xi1>
    %214 = vector.broadcast %213 : vector<1x124xi1> to vector<8x124xi1>
    %215 = vector.broadcast %cst_52 : f32 to vector<8x124xf32>
    %216 = arith.select %214, %151, %215 : vector<8x124xi1>, vector<8x124xf32>
    %cst_53 = arith.constant dense<0.000000e+00> : vector<8xf32>
    %217 = vector.multi_reduction <add>, %216, %cst_53 [1] : vector<8x124xf32> to vector<8xf32>
    %218 = vector.shape_cast %217 : vector<8xf32> to vector<8x1xf32>
    %cst_54 = arith.constant 0.000000e+00 : f32
    %219 = vector.shape_cast %23 : vector<1x124xi1> to vector<1x124xi1>
    %220 = vector.broadcast %219 : vector<1x124xi1> to vector<8x124xi1>
    %221 = vector.broadcast %cst_54 : f32 to vector<8x124xf32>
    %222 = arith.select %220, %153, %221 : vector<8x124xi1>, vector<8x124xf32>
    %cst_55 = arith.constant dense<0.000000e+00> : vector<8xf32>
    %223 = vector.multi_reduction <add>, %222, %cst_55 [1] : vector<8x124xf32> to vector<8xf32>
    %224 = vector.shape_cast %223 : vector<8xf32> to vector<8x1xf32>
    %225 = arith.addf %91, %93 : vector<8x1xf32>
    %226 = arith.mulf %218, %224 : vector<8x1xf32>
    %227 = math.log %226 : vector<8x1xf32>
    %228 = arith.addf %225, %227 : vector<8x1xf32>
    %229 = arith.subf %228, %95 : vector<8x1xf32>
    %cst_56 = arith.constant 5.000000e-01 : f32
    %230 = vector.broadcast %cst_56 : f32 to vector<8x1xf32>
    %231 = arith.mulf %230, %229 : vector<8x1xf32>
    %232 = arith.addf %212, %231 : vector<8x1xf32>
    %c8_i32 = arith.constant 8 : i32
    %233 = arith.muli %arg0, %c8_i32 : i32
    %234 = tpu.iota {dimensions = array<i32: 0>} : vector<8x1xi32>
    %235 = vector.broadcast %233 : i32 to vector<8x1xi32>
    %236 = arith.addi %235, %234 : vector<8x1xi32>
    %c16_i32 = arith.constant 16 : i32
    %237 = vector.broadcast %c16_i32 : i32 to vector<8x1xi32>
    %238 = arith.cmpi slt, %236, %237 : vector<8x1xi32>
    %cst_57 = arith.constant 0.000000e+00 : f32
    %239 = vector.broadcast %cst_57 : f32 to vector<8x1xf32>
    %240 = arith.select %238, %232, %239 : vector<8x1xi1>, vector<8x1xf32>
    %cst_58 = arith.constant dense<0.000000e+00> : vector<1xf32>
    %241 = vector.multi_reduction <add>, %240, %cst_58 [0] : vector<8x1xf32> to vector<1xf32>
    %242 = vector.shape_cast %241 : vector<1xf32> to vector<1x1xf32>
    %243 = vector.shape_cast %242 : vector<1x1xf32> to vector<1x1x1xf32>
    %244 = vector.broadcast %243 : vector<1x1x1xf32> to vector<1x8x128xf32>
    %c0_59 = arith.constant 0 : index
    %c0_60 = arith.constant 0 : index
    %c0_61 = arith.constant 0 : index
    %245 = vector.load %arg3[%c0_59, %c0_60, %c0_61] : memref<1x8x128xf32, #tpu.memory_space<vmem>>, vector<1x8x128xf32>
    tpu.vector_store %arg3[%c0_59, %c0_60, %c0_61], %244 {strides = array<i32>} : memref<1x8x128xf32, #tpu.memory_space<vmem>>, vector<1x8x128xf32>,
    return
  }
  func.func @transform_0(%arg0: i32) -> (i32, i32) {
    %c0_i32 = arith.constant 0 : i32
    %c0_i32_0 = arith.constant 0 : i32
    return %arg0, %c0_i32 : i32, i32
  }
  func.func @transform_1(%arg0: i32) -> (i32, i32) {
    %c0_i32 = arith.constant 0 : i32
    %c0_i32_0 = arith.constant 0 : i32
    return %arg0, %c0_i32 : i32, i32
  }
  func.func @transform_2(%arg0: i32) -> (i32, i32, i32) {
    %c0_i32 = arith.constant 0 : i32
    %c0_i32_0 = arith.constant 0 : i32
    %c0_i32_1 = arith.constant 0 : i32
    return %arg0, %c0_i32, %c0_i32_0 : i32, i32, i32
  }
}

</mosaic_0001>

<bundles_post_ra>
// kernel: tpu_custom_call.1
= control target key start
LH: loop header
LB: loop body
LE: loop exit
PB: predicated region body
PF: predicated region fallthrough
CT: control target
= control target key end

     0   :  { %7 = vsyncpa [#allocation3], 0  ;;  %s1050_s0 = inlined_call_operand.hbm [shape: f32[16,124], index: 0, kind: input, shape index: {}]   ;;  %s1051_s1 = inlined_call_operand.hbm [shape: f32[16,124], index: 1, kind: input, shape index: {}]   ;;  %s1052_s2 = inlined_call_operand.hbm [shape: f32[2,8,128], index: 2, kind: output, shape index: {}]  }
   0x1   :  { %9 = vsyncpa [#allocation3 + $0x1], 0 }
   0x2   :  { %10 = vsyncpa [#allocation6], 0 }
   0x3   :  { %12 = vsyncpa [#allocation6 + $0x1], 0 }
   0x4   :  { %13 = vsyncpa [#allocation4], 0 }
   0x5   :  { %15 = vsyncpa [#allocation4 + $0x1], 0  ;;  %s703_s9 = smov 0   ;;  %s705_s10 = smov 0  }
   0x6   :  { %s707_s11 = smov 0   ;;  %s709_s12 = smov 0  }
   0x7 LB: > { %s724_s13 = sadd.s32 4294967295, %s683_s12   ;;  %s474_s14 = sadd.s32 4294967294, %s683_s12   ;;  %s683_s12 = sphi %s709_s12, %s1077_s12   ;;  %s679_s11 = sphi %s707_s11, %s1076_s11   ;;  %s675_s10 = sphi %s705_s10, %s1075_s10   ;;  %s671_s9 = sphi %s703_s9, %s1074_s9  }
   0x8   : > { %s728_s15 = sadd.s32 1, %s683_s12   ;;  %s28_s16 = sadd.s32 1, %s679_s11 }
   0x9   : > { %s25_s17 = ssub.s32 %s683_s12, %s728_s15  ;;  %p35_p0 = scmp.ne.s32.totalorder %s679_s11, %s675_s10 }
   0xa   : > { %p26_p1 = scmp.eq.s32.totalorder %s25_s17, 0  ;;  %p36_p2 = scmp.eq.s32.totalorder %s683_s12, 0 }
   0xb   : > { %p41_p3 = scmp.ne.s32.totalorder %s675_s10, %s671_s9  ;;  %p42_p4 = scmp.eq.s32.totalorder %s724_s13, 0 }
   0xc   : > { %s740_s18 = scalar_select %p26_p1, %s679_s11, %s28_s16  }
   0xd   : > { %p742_p5 = por %p36_p2, %p35_p0  ;;  %p746_p6 = por %p42_p4, %p41_p3 }
   0xe   : > { %p91_p7 = scmp.eq.s32.totalorder %s724_s13, 1  ;;  %p97_p8 = scmp.eq.s32.totalorder %s474_s14, 1 }
   0xf   : > { %s1056_s20 = scalar_select %p746_p6, 1, 0 }
  0x10   : > { %p507_p10 = scmp.lt.s32.totalorder %s683_s12, 2  ;;  %p753_p11 = por %p91_p7, %p35_p0 }
  0x11   : > { %p757_p12 = por %p97_p8, %p41_p3  ;;  %s762_s23 = sand.u32 1, %s679_s11  }
  0x12   : > { %s1057_s21 = scalar_select %p753_p11, 1, 0 }
  0x13   : > { %s1058_s22 = scalar_select %p757_p12, 1, 0 }
  0x14   : > { %s478_s24 = sshll.u32 %s683_s12, 7  ;;  %s477_s25 = sshll.u32 %s762_s23, 3 }
  0x15   : > { %s771_s28 = scalar_lea.hbm %s1050_s0, %s478_s24  ;;  %s121_s29 = scalar_lea.vmem [#allocation2], %s477_s25 }
  0x16   : > { %s128_s30 = sshll.u32 %s121_s29, 4  ;;  %p777_p13 = pnand %p507_p10, %p742_p5  ;;  %s781_s30 = int_to_ptr.vmem [resolvable:$true] %s128_s30 }
  0x17   : > { %s118_s4 = scalar_lea.sflag [#allocation3], %s762_s23  ;;  %s553_s5 = scalar_lea.hbm %s771_s28, 128 }
  0x18   : > { %p554_p2 = scmp.ne.s32.totalorder %s771_s28, %s553_s5  ;;  %p555_p3 = pneg %p777_p13 }
  0x19   : > { %s558_s8 = scalar_lea.hbm %s1050_s0, 256  ;;  %p559_p5 = scmp.lt.u32.totalorder %s771_s28, %s1050_s0 }
  0x1a   : > { %p556_p4 = pnand %p555_p3, %p554_p2  ;;  %p560_p8 = scmp.lt.u32.totalorder %s558_s8, %s553_s5 }
  0x1b   : > { %p562_p9 = scmp.lt.u32.totalorder %s553_s5, %s771_s28 }
  0x1c   : > { %p557_p7 = pneg %p556_p4  ;;  %p561_p10 = por %p560_p8, %p559_p5 }
  0x1e   : > { %p563_p0 = por %p562_p9, %p561_p10 }
  0x20   : > { %p564_p1 = pnand %p563_p0, %p557_p7 }
  0x22   : > { %567 = shalt.err (!%p564_p1)
}
  0x23   : > { %s568_s17 = scalar_lea.vmem %s781_s30, 128  ;;  %s685_s19 = smov [#allocation2]  }
  0x24   : > { %p569_p2 = scmp.ne.s32.totalorder %s781_s30, %s568_s17  ;;  %s573_s26 = sshll.u32 %s685_s19, 4  ;;  %s574_s26 = int_to_ptr.vmem [resolvable:$false] %s573_s26 }
  0x25   : > { %s575_s27 = scalar_lea.vmem %s574_s26, 256  ;;  %p576_p11 = scmp.lt.s32.totalorder %s781_s30, %s574_s26 }
  0x26   : > { %p571_p4 = pnand %p569_p2, %p555_p3  ;;  %p577_p5 = scmp.lt.s32.totalorder %s575_s27, %s568_s17 }
  0x28   : > { %p572_p12 = pneg %p571_p4  ;;  %p578_p8 = por %p577_p5, %p576_p11 }
  0x2a   : > { %p579_p9 = pnand %p578_p8, %p572_p12 }
  0x2c   : > { %582 = shalt.err (!%p579_p9)
}
  0x2d   : > { %499 = dma.hbm_to_vmem [thread:$0]  (!%p777_p13), %s771_s28, 128, %s781_s30, %s118_s4  }
  0x2e   : > { %p1060_p0 = scmp.lt.s32.totalorder %s683_s12, 3  ;;  %p1061_p1 = scmp.ge.s32.totalorder %s683_s12, 1 }
  0x2f   : > { %s824_s7 = scalar_lea.hbm %s1051_s1, %s478_s24  ;;  %s139_s8 = scalar_lea.vmem [#allocation5], %s477_s25 }
  0x30   : > { %p815_p7 = pnand %p1061_p1, %p1060_p0  ;;  %s146_s14 = sshll.u32 %s139_s8, 4  ;;  %s147_s14 = int_to_ptr.vmem [resolvable:$true] %s146_s14 }
  0x31   : > { %s136_s28 = scalar_lea.sflag [#allocation6], %s762_s23  ;;  %s583_s30 = scalar_lea.hbm %s824_s7, 128 }
  0x32   : > { %s1062_s29 = scalar_select %p815_p7, 1, 0 }
  0x33   : > { %p584_p11 = scmp.ne.s32.totalorder %s824_s7, %s583_s30  ;;  %s588_s24 = scalar_lea.hbm %s1051_s1, 256 }
  0x34   : > { %p589_p2 = scmp.lt.u32.totalorder %s824_s7, %s1051_s1  ;;  %p590_p4 = scmp.lt.u32.totalorder %s588_s24, %s583_s30 }
  0x35   : > { %p586_p12 = pnand %p584_p11, %p555_p3  ;;  %p592_p8 = scmp.lt.u32.totalorder %s583_s30, %s824_s7 }
  0x36   : > { %p591_p5 = por %p590_p4, %p589_p2 }
  0x37   : > { %p587_p10 = pneg %p586_p12 }
  0x38   : > { %p593_p9 = por %p592_p8, %p591_p5 }
  0x3a   : > { %p594_p0 = pnand %p593_p9, %p587_p10 }
  0x3c   : > { %597 = shalt.err (!%p594_p0)
}
  0x3d   : > { %s598_s23 = scalar_lea.vmem %s147_s14, 128  ;;  %s686_s25 = smov [#allocation5]  }
  0x3e   : > { %p599_p1 = scmp.ne.s32.totalorder %s147_s14, %s598_s23  ;;  %s603_s26 = sshll.u32 %s686_s25, 4  ;;  %s604_s26 = int_to_ptr.vmem [resolvable:$false] %s603_s26 }
  0x3f   : > { %s605_s27 = scalar_lea.vmem %s604_s26, 256  ;;  %p606_p6 = scmp.lt.s32.totalorder %s147_s14, %s604_s26 }
  0x40   : > { %p601_p11 = pnand %p599_p1, %p555_p3  ;;  %p607_p7 = scmp.lt.s32.totalorder %s605_s27, %s598_s23 }
  0x42   : > { %p602_p12 = pneg %p601_p11  ;;  %p608_p2 = por %p607_p7, %p606_p6 }
  0x44   : > { %p609_p4 = pnand %p608_p2, %p602_p12 }
  0x46   : > { %612 = shalt.err (!%p609_p4)
}
  0x47   : > { %502 = dma.hbm_to_vmem [thread:$0]  (!%p777_p13), %s824_s7, 128, %s147_s14, %s136_s28  }
  0x48   : > { %p1063_p10 = scmp.ne.s32.totalorder %s1062_s29, 0 }
  0x49   : > { %s851_s5 = sand.u32 (!%p1063_p10), 1, %s675_s10   ;;  %p1064_p6 = scmp.ne.s32.totalorder (!%p1063_p10), %s1056_s20, 0 }
  0x4a   : > { %155 = sbr.rel (%p1063_p10) target bundleno = 471 (0x1d7), region = 28  ;;  %s854_s6 = sshll.u32 (!%p1063_p10), %s851_s5, 3 }
  0x4b   : > { %s158_s8 = scalar_lea.sflag (!%p1063_p10), [#allocation3], %s851_s5  ;;  %s161_s30 = scalar_lea.vmem (!%p1063_p10), [#allocation2], %s854_s6 }
  0x51   : > { %658 = dma.done.wait (%p1064_p6), %s158_s8, 128  }
  0x52   : > { %660 = vsyncadd (%p1064_p6), %s158_s8, 4294967168  ;;  %s167_s3 = scalar_lea.sflag [#allocation6], %s851_s5  ;;  %s170_s29 = scalar_lea.vmem [#allocation5], %s854_s6 }
  0x53   : > { %662 = dma.done.wait (%p1064_p6), %s167_s3, 128  }
  0x54   : > { %664 = vsyncadd (%p1064_p6), %s167_s3, 4294967168  ;;  %v199_v0 = vlaneseq  ;;  %vm218_vm4 = vcmask 1014784   ;;  %v880_v3 = vld [vmem:[%s161_s30] sm:$0xff]  ;;  %v882_v4 = vld [vmem:[%s170_s29] sm:$0xff]  ;;  %s485_s20 = sshll.u32 %s724_s13, 3  ;;  %s487_s7 = sshll.u32 %s724_s13, 7 }
  0x55   : > { %s195_s14 = scalar_lea.vmem [#allocation7], %s854_s6  ;;  %s1006_s24 = scalar_lea.hbm %s1052_s2, %s487_s7 }
  0x56   : > { %v869_v1 = vand.u32 127, %v199_v0  ;;  %s381_s28 = sshll.u32 %s195_s14, 4  ;;  %s368_s17 = scalar_lea.sflag [#allocation4], %s851_s5  ;;  %s1008_s28 = int_to_ptr.vmem [resolvable:$true] %s381_s28 }
  0x57   : > { %s613_s19 = scalar_lea.vmem %s1008_s28, 128  ;;  %p1071_p3 = scmp.ne.s32.totalorder %s1057_s21, 0 }
  0x58   : > { %vm204_vm0 = vcmp.ge.s32.totalorder %v869_v1, 31  ;;  %vm205_vm1 = vcmp.lt.s32.totalorder %v869_v1, 62  ;;  %vm202_vm3 = vcmp.lt.s32.totalorder %v869_v1, 31  ;;  %vm207_vm5 = vcmp.ge.s32.totalorder %v869_v1, 62  ;;  %p614_p13 = scmp.ne.s32.totalorder %s1008_s28, %s613_s19  ;;  %s687_s13 = smov [#allocation7]  }
  0x59   : > { %vm873_vm2 = vmand %vm204_vm0, %vm205_vm1  ;;  %vm208_vm6 = vcmp.lt.s32.totalorder %v869_v1, 93  ;;  %v215_v6 = vsel %vm202_vm3, %v880_v3, -inf  ;;  %v216_v8 = vsel %vm202_vm3, %v882_v4, -inf  ;;  %vm210_vm8 = vcmp.ge.s32.totalorder %v869_v1, 93  ;;  %s617_s23 = sshll.u32 %s687_s13, 4  ;;  %s618_s23 = int_to_ptr.vmem [resolvable:$false] %s617_s23 }
  0x5a   : > { %v230_v5 = vsel %vm873_vm2, %v880_v3, -inf  ;;  %v231_v7 = vsel %vm873_vm2, %v882_v4, -inf  ;;  %v219_v10 = vsel %vm218_vm4, %v215_v6, -inf  ;;  %vm898_vm7 = vmand %vm207_vm5, %vm208_vm6  ;;  %vm211_vm9 = vcmp.lt.s32.totalorder %v869_v1, 124  ;;  %p615_p7 = pnand %p614_p13, %p1071_p3  ;;  %s619_s25 = scalar_lea.vmem %s618_s23, 256 }
  0x5b   : > { %v233_v9 = vsel %vm218_vm4, %v230_v5, -inf  ;;  %220 = vmax.xlane.f32.xlu0 %v219_v10  ;;  %v236_v12 = vsel %vm218_vm4, %v231_v7, -inf  ;;  %v222_v13 = vsel %vm218_vm4, %v216_v8, -inf  ;;  %v245_v14 = vsel %vm898_vm7, %v882_v4, -inf  ;;  %vm912_vm10 = vmand %vm210_vm8, %vm211_vm9  ;;  %p620_p8 = scmp.lt.s32.totalorder %s1008_s28, %s618_s23  ;;  %p621_p9 = scmp.lt.s32.totalorder %s619_s25, %s613_s19 }
  0x5c   : > { %234 = vmax.xlane.f32.xlu1 %v233_v9  ;;  %v244_v15 = vsel %vm898_vm7, %v880_v3, -inf  ;;  %v250_v17 = vsel %vm218_vm4, %v245_v14, -inf  ;;  %v259_v19 = vsel %vm912_vm10, %v882_v4, -inf  ;;  %v258_v20 = vsel %vm912_vm10, %v880_v3, -inf  ;;  %p616_p5 = pneg %p615_p7 }
  0x5d   : > { %v247_v18 = vsel %vm218_vm4, %v244_v15, -inf  ;;  %v264_v21 = vsel %vm218_vm4, %v259_v19, -inf  ;;  %v261_v22 = vsel %vm218_vm4, %v258_v20, -inf  ;;  %v198_v6 = vadd.f32 %v882_v4, %v880_v3  ;;  %p622_p0 = por %p621_p9, %p620_p8 }
  0x5f   : > { %223 = vmax.xlane.f32.xlu0 %v222_v13  ;;  %v232_v10 = vsel %vm873_vm2, %v198_v6, -inf  ;;  %v217_v13 = vsel %vm202_vm3, %v198_v6, -inf  ;;  %v260_v15 = vsel %vm912_vm10, %v198_v6, -inf  ;;  %v246_v2 = vsel %vm898_vm7, %v198_v6, -inf  ;;  %p623_p1 = pnand %p622_p0, %p616_p5 }
  0x60   : > { %237 = vmax.xlane.f32.xlu1 %v236_v12  ;;  %v225_v14 = vsel %vm218_vm4, %v217_v13, -inf  ;;  %v253_v1 = vsel %vm218_vm4, %v246_v2, -inf }
  0x63   : > { %248 = vmax.xlane.f32.xlu0 %v247_v18 }
  0x64   : > { %251 = vmax.xlane.f32.xlu1 %v250_v17  ;;  %v267_v17 = vsel %vm218_vm4, %v260_v15, -inf }
  0x67   : > { %262 = vmax.xlane.f32.xlu0 %v261_v22 }
  0x68   : > { %265 = vmax.xlane.f32.xlu1 %v264_v21 }
  0xe8   : > { %v221_v24 = vpop.xlane.xlu0 %220 }
  0xe9   : > { %v235_v23 = vpop.xlane.xlu1 %234  ;;  %v270_v30 = vsel %vm202_vm3, %v221_v24, 0.0 }
  0xea   : > { %v272_v29 = vsel %vm873_vm2, %v235_v23, 0.0 }
  0xeb   : > { %v273_v38 = vadd.f32 %v272_v29, %v270_v30 }
  0xec   : > { %v224_v26 = vpop.xlane.xlu0 %223 }
  0xed   : > { %v238_v25 = vpop.xlane.xlu1 %237  ;;  %v928_v28 = vadd.f32 %v224_v26, %v221_v24  ;;  %v271_v32 = vsel %vm202_vm3, %v224_v26, 0.0 }
  0xee   : > { %v926_v27 = vadd.f32 %v238_v25, %v235_v23  ;;  %v274_v31 = vsel %vm873_vm2, %v238_v25, 0.0 }
  0xef   : > { %v275_v39 = vadd.f32 %v274_v31, %v271_v32 }
  0xf0   : > { %v249_v34 = vpop.xlane.xlu0 %248 }
  0xf1   : > { %v252_v33 = vpop.xlane.xlu1 %251  ;;  %v276_v36 = vsel %vm898_vm7, %v249_v34, 0.0 }
  0xf2   : > { %v278_v35 = vsel %vm898_vm7, %v252_v33, 0.0  ;;  %v942_v37 = vadd.f32 %v252_v33, %v249_v34  ;;  %v277_v41 = vadd.f32 %v276_v36, %v273_v38 }
  0xf3   : > { %v279_v40 = vadd.f32 %v278_v35, %v275_v39 }
  0xf4   : > { %v946_v43 = vpop.xlane.xlu0 %262 }
  0xf5   : > { %v944_v42 = vpop.xlane.xlu1 %265  ;;  %v280_v45 = vsel %vm912_vm10, %v946_v43, 0.0 }
  0xf6   : > { %v282_v44 = vsel %vm912_vm10, %v944_v42, 0.0  ;;  %v281_v47 = vadd.f32 %v280_v45, %v277_v41 }
  0xf7   : > { %v283_v46 = vadd.f32 %v282_v44, %v279_v40 }
  0xf8   : > { %v284_v49 = vsub.f32 %v880_v3, %v281_v47 }
  0xf9   : > { %v287_v48 = vsub.f32 %v882_v4, %v283_v46  ;;  %v239_v4 = vsel %vm218_vm4, %v232_v10, -inf }
  0xfa   : > { %v285_v51 = vmul.f32 1.442695, %v284_v49 }
  0xfb   : > { %v288_v50 = vmul.f32 1.442695, %v287_v48 }
  0xfd   : > { %541 = vpow2.f32 %v288_v50  ;;  %v355_v50 = vshrl.u32 %v199_v0, 7 }
  0xfe   : > { %543 = vpow2.f32 %v285_v51 }
 0x107   : > { %v542_v52 = vpop.eup %541 }
 0x108   : > { %v544_v53 = vpop.eup %543  ;;  %v294_v54 = vsel %vm202_vm3, %v542_v52, 0.0  ;;  %v309_v58 = vsel %vm873_vm2, %v542_v52, 0.0  ;;  %v325_v62 = vsel %vm898_vm7, %v542_v52, 0.0  ;;  %v341_v8 = vsel %vm912_vm10, %v542_v52, 0.0 }
 0x109   : > { %v295_v55 = vsel %vm218_vm4, %v294_v54, 0.0  ;;  %v290_v56 = vsel %vm202_vm3, %v544_v53, 0.0  ;;  %v305_v59 = vsel %vm873_vm2, %v544_v53, 0.0  ;;  %v310_v60 = vsel %vm218_vm4, %v309_v58, 0.0 }
 0x10a   : > { %296 = vadd.xlane.f32.xlu1 %v295_v55  ;;  %v291_v57 = vsel %vm218_vm4, %v290_v56, 0.0  ;;  %v306_v61 = vsel %vm218_vm4, %v305_v59, 0.0  ;;  %v321_v63 = vsel %vm898_vm7, %v544_v53, 0.0  ;;  %v326_v5 = vsel %vm218_vm4, %v325_v62, 0.0 }
 0x10b   : > { %292 = vadd.xlane.f32.xlu0 %v291_v57  ;;  %v322_v7 = vsel %vm218_vm4, %v321_v63, 0.0  ;;  %v337_v9 = vsel %vm912_vm10, %v544_v53, 0.0  ;;  %v342_v12 = vsel %vm218_vm4, %v341_v8, 0.0 }
 0x10c   : > { %v338_v3 = vsel %vm218_vm4, %v337_v9, 0.0 }
 0x10e   : > { %311 = vadd.xlane.f32.xlu1 %v310_v60 }
 0x10f   : > { %307 = vadd.xlane.f32.xlu0 %v306_v61 }
 0x112   : > { %327 = vadd.xlane.f32.xlu1 %v326_v5 }
 0x113   : > { %323 = vadd.xlane.f32.xlu0 %v322_v7 }
 0x116   : > { %343 = vadd.xlane.f32.xlu1 %v342_v12 }
 0x117   : > { %339 = vadd.xlane.f32.xlu0 %v338_v3 }
 0x11a   : > { %240 = vmax.xlane.f32.xlu1 %v239_v4 }
 0x11b   : > { %226 = vmax.xlane.f32.xlu0 %v225_v14 }
 0x11e   : > { %268 = vmax.xlane.f32.xlu1 %v267_v17 }
 0x11f   : > { %254 = vmax.xlane.f32.xlu0 %v253_v1 }
 0x197   : > { %v297_v18 = vpop.xlane.xlu1 %296 }
 0x198   : > { %v293_v19 = vpop.xlane.xlu0 %292 }
 0x199   : > { %v299_v20 = vmul.f32 %v297_v18, %v293_v19 }
 0x19b   : > { %545 = vlog2.f32 %v299_v20  ;;  %v312_v21 = vpop.xlane.xlu1 %311 }
 0x19c   : > { %v308_v22 = vpop.xlane.xlu0 %307 }
 0x19d   : > { %v314_v23 = vmul.f32 %v312_v21, %v308_v22 }
 0x19f   : > { %547 = vlog2.f32 %v314_v23  ;;  %v328_v16 = vpop.xlane.xlu1 %327 }
 0x1a0   : > { %v324_v24 = vpop.xlane.xlu0 %323 }
 0x1a1   : > { %v330_v11 = vmul.f32 %v328_v16, %v324_v24 }
 0x1a3   : > { %549 = vlog2.f32 %v330_v11  ;;  %v344_v25 = vpop.xlane.xlu1 %343 }
 0x1a4   : > { %v340_v26 = vpop.xlane.xlu0 %339 }
 0x1a5   : > { %v546_v29 = vpop.eup %545  ;;  %v346_v30 = vmul.f32 %v344_v25, %v340_v26 }
 0x1a6   : > { %v301_v31 = vmul.f32 0.6931472, %v546_v29 }
 0x1a7   : > { %551 = vlog2.f32 %v346_v30  ;;  %v241_v36 = vpop.xlane.xlu1 %240 }
 0x1a8   : > { %v302_v32 = vadd.f32 %v301_v31, %v928_v28  ;;  %v227_v34 = vpop.xlane.xlu0 %226  ;;  %v345_v28 = vadd.f32 %v944_v42, %v946_v43 }
 0x1a9   : > { %v548_v33 = vpop.eup %547 }
 0x1aa   : > { %v316_v35 = vmul.f32 0.6931472, %v548_v33  ;;  %v303_v38 = vsub.f32 %v302_v32, %v227_v34 }
 0x1ab   : > { %v269_v54 = vpop.xlane.xlu1 %268 }
 0x1ac   : > { %v317_v39 = vadd.f32 %v316_v35, %v926_v27  ;;  %v255_v45 = vpop.xlane.xlu0 %254  ;;  %v304_v46 = vmul.f32 0.5, %v303_v38  ;;  %v356_v27 = vstv %s485_s20 }
 0x1ad   : > { %v550_v40 = vpop.eup %549  ;;  %v357_v57 = vadd.s32 %v356_v27, %v355_v50 }
 0x1ae   : > { %v332_v41 = vmul.f32 0.6931472, %v550_v40  ;;  %v318_v44 = vsub.f32 %v317_v39, %v241_v36 }
 0x1af   : > { %vm358_vm11 = vcmp.lt.s32.totalorder %v357_v57, 16 }
 0x1b0   : > { %v319_v47 = vmul.f32 0.5, %v318_v44  ;;  %v333_v48 = vadd.f32 %v332_v41, %v942_v37 }
 0x1b1   : > { %v552_v49 = vpop.eup %551 }
 0x1b2   : > { %v348_v51 = vmul.f32 0.6931472, %v552_v49  ;;  %v320_v52 = vadd.f32 %v319_v47, %v304_v46  ;;  %v334_v53 = vsub.f32 %v333_v48, %v255_v45 }
 0x1b4   : > { %v335_v55 = vmul.f32 0.5, %v334_v53  ;;  %v349_v56 = vadd.f32 %v348_v51, %v345_v28 }
 0x1b6   : > { %v336_v58 = vadd.f32 %v335_v55, %v320_v52  ;;  %v350_v59 = vsub.f32 %v349_v56, %v269_v54 }
 0x1b8   : > { %v351_v60 = vmul.f32 0.5, %v350_v59 }
 0x1ba   : > { %v352_v37 = vadd.f32 %v351_v60, %v336_v58 }
 0x1bc   : > { %v359_v61 = vsel %vm358_vm11, %v352_v37, 0.0 }
 0x1bd   : > { %v360_v42 = vrot.slane %v359_v61, 4 }
 0x1bf   : > { %v361_v0 = vadd.f32 %v360_v42, %v359_v61 }
 0x1c1   : > { %v362_v43 = vrot.slane %v361_v0, 2 }
 0x1c3   : > { %v363_v62 = vadd.f32 %v362_v43, %v361_v0 }
 0x1c5   : > { %v364_v63 = vrot.slane %v363_v62, 1 }
 0x1c7   : > { %v365_v5 = vadd.f32 %v364_v63, %v363_v62 }
 0x1c9   : > { %366 = vst [vmem:[%s195_s14] sm:$0xff] %v365_v5 }
 0x1ca   : > { %626 = shalt.err (!%p623_p1)
}
 0x1cb   : > { %s627_s26 = scalar_lea.hbm %s1006_s24, 128  ;;  %s631_s6 = scalar_lea.hbm %s1052_s2, 256 }
 0x1cc   : > { %p628_p11 = scmp.ne.s32.totalorder %s1006_s24, %s627_s26  ;;  %p632_p4 = scmp.lt.u32.totalorder %s1006_s24, %s1052_s2 }
 0x1cd   : > { %p633_p10 = scmp.lt.u32.totalorder %s631_s6, %s627_s26  ;;  %p635_p13 = scmp.lt.u32.totalorder %s627_s26, %s1006_s24 }
 0x1ce   : > { %p629_p12 = pnand %p628_p11, %p1071_p3 }
 0x1cf   : > { %p634_p6 = por %p633_p10, %p632_p4 }
 0x1d0   : > { %p630_p2 = pneg %p629_p12 }
 0x1d1   : > { %p636_p7 = por %p635_p13, %p634_p6 }
 0x1d3   : > { %p637_p5 = pnand %p636_p7, %p630_p2 }
 0x1d5   : > { %640 = shalt.err (!%p637_p5)
}
 0x1d6   : > { %494 = dma.vmem_to_hbm [thread:$0]  (%p1071_p3), %s1008_s28, 128, %s1006_s24, %s368_s17  }
 0x1d7 PF: > { %s393_s3 = sand.u32 1, %s671_s9   ;;  %p1072_p8 = scmp.ne.s32.totalorder %s1058_s22, 0 }
 0x1d8   : > { %p1073_p9 = scmp.ge.s32.totalorder %s683_s12, 2  ;;  %s394_s29 = scalar_lea.sflag [#allocation4], %s393_s3 }
 0x1da   : > { %p504_p0 = pnand %p1073_p9, %p1072_p8 }
 0x1dc   : > { %666 = dma.done.wait (!%p504_p0), %s394_s29, 128  }
 0x1dd   : > { %668 = vsyncadd (!%p504_p0), %s394_s29, 4294967168  ;;  %p18_p1 = scmp.ge.s32.totalorder %s728_s15, 4   ;;  %s1074_s9 = smov %s675_s10 }
 0x1de   : > { %s1075_s10 = smov %s679_s11  ;;  %s1076_s11 = smov %s740_s18 }
 0x1df   : > { %s1077_s12 = smov %s728_s15  ;;  %20 = sbr.rel (!%p18_p1) target bundleno = 7 (0x7), region = 86 }
 0x1e6   :  { %399 = vsyncpa [#allocation3], 1 }
 0x1e7   :  { %401 = vsyncpa [#allocation3 + $0x1], 1 }
 0x1e8   :  { %402 = vsyncpa [#allocation6], 1 }
 0x1e9   :  { %404 = vsyncpa [#allocation6 + $0x1], 1 }
 0x1ea   :  { %405 = vsyncpa [#allocation4], 1 }
 0x1eb   :  { %407 = vsyncpa [#allocation4 + $0x1], 1 }

</bundles_post_ra>
